<compile_context>
chip_gen: v6e
topology: v6e:2x2x1
jax: 0.10.0
libtpu: 0.0.40
codegen_flags: <defaults>
</compile_context>

<pallas_src>
import functools

import jax
import jax.numpy as jnp
from jax.experimental import pallas as pl
from jax.experimental.pallas import tpu as pltpu


def _bn1d_kernel(x_ref, gamma_ref, beta_ref, o_ref, flag_ref, *,
                 eps, inv_count, pad_count, low_precision_apply):
    # x_ref / o_ref: (N, TILE_C, L_pad); gamma_ref / beta_ref: (1, TILE_C, 1)
    # flag_ref: (1, 1, 1) int32 per-tile NaN flag.
    x = x_ref[...]
    xf = x.astype(jnp.float32)

    # --- NaN pass-through flag (exact isnan, computed on VMEM-resident data;
    #     zero lane padding contributes no NaNs; +/-inf does not false-trigger).
    nan_c = jnp.max(jnp.isnan(xf).astype(jnp.float32), axis=(0, 2), keepdims=True)
    flag_ref[...] = jnp.max(nan_c, axis=1, keepdims=True).astype(jnp.int32)

    # --- Per-channel statistics (two-pass / centered variance, f32 accumulation).
    s1 = jnp.sum(xf, axis=(0, 2), keepdims=True)          # (1, TILE_C, 1)
    mean = s1 * inv_count                                  # true 1/(N*L) count
    centered = xf - mean
    ss = jnp.sum(centered * centered, axis=(0, 2), keepdims=True)
    # Remove the contribution of the zero lane-padding: each padded element
    # contributed (0 - mean)^2 = mean^2 to the centered sum of squares.
    ss = ss - pad_count * (mean * mean)
    var = jnp.maximum(ss * inv_count, 0.0)                 # biased (training-mode) var
    inv_std = jax.lax.rsqrt(var + eps)

    gamma = gamma_ref[...].astype(jnp.float32)
    beta = beta_ref[...].astype(jnp.float32)
    scale = gamma * inv_std
    shift = beta - mean * scale

    if low_precision_apply:
        # bf16 normalize pass: halves VALU op count, avoids a full f32 temp.
        o_ref[...] = (x * scale.astype(x.dtype) + shift.astype(x.dtype)).astype(o_ref.dtype)
    else:
        o_ref[...] = (xf * scale + shift).astype(o_ref.dtype)


def _vmem_capacity_bytes():
    try:
        return int(pltpu.get_tpu_info().vmem_capacity_bytes)
    except Exception:
        return 64 * 1024 * 1024  # conservative: v7x per-core VMEM


def _choose_tile_c(N, C, L_pad, itemsize, vmem_limit_bytes):
    """Channel tile: multiple of 8 dividing C (or full C), sized for VMEM,
    preferring >=4 (else >=2) grid steps for v7x megacore sharding."""
    # Real per-channel-row footprint per grid step:
    #   2x double-buffered input block + 2x double-buffered output block
    #   + ~2 block-sized f32 temporaries (xf / centered).
    per_c = N * L_pad * (4 * itemsize + 2 * 4)
    budget = int(vmem_limit_bytes * 0.9)
    max_rows = max(1, budget // per_c)

    if C % 8 != 0:
        tile_c = C  # tiny / odd channel counts: single full-C block
    else:
        candidates = [t for t in range(8, C + 1, 8) if C % t == 0 and t <= max_rows]
        tile_c = 8
        for min_steps in (4, 2, 1):
            ok = [t for t in candidates if C // t >= min_steps]
            if ok:
                tile_c = max(ok)
                break

    if tile_c * per_c > budget:
        # TODO(synk): two-phase structure (grid over (C, L) accumulating s1/s2
        # into resident per-channel scratch, then a second apply pass) for very
        # long N*L where even an 8-channel block exceeds VMEM.
        raise ValueError(
            f"BatchNorm1D Pallas kernel: minimum channel tile ({tile_c} ch, "
            f"{tile_c * per_c} bytes) exceeds the VMEM budget ({budget} bytes); "
            f"N*L is too large for the single-pass tiling.")
    return tile_c


def batch_norm_1d(x, gamma, beta, eps=1e-5):
    """x: (N, C, L) float array. gamma, beta: (C,). Matches BatchNorm1D.forward."""
    N, C, L = x.shape

    # Lane-dense last dim: zero-pad L up to a multiple of 128 (exact, see kernel).
    L_pad = ((L + 127) // 128) * 128
    x_in = x if L_pad == L else jnp.pad(x, ((0, 0), (0, 0), (0, L_pad - L)))

    vmem_bytes = _vmem_capacity_bytes()
    vmem_limit = int(vmem_bytes * 0.65)   # ~41 MiB on v7x (64 MiB), ~83 MiB on v5e/v6e
    tile_c = _choose_tile_c(N, C, L_pad, x.dtype.itemsize, vmem_limit)
    assert C % tile_c == 0
    num_tiles = C // tile_c

    g3 = gamma.reshape(1, C, 1)
    b3 = beta.reshape(1, C, 1)

    low_precision_apply = (x.dtype == jnp.bfloat16)

    y_pad, flags = pl.pallas_call(
        functools.partial(
            _bn1d_kernel,
            eps=float(eps),
            inv_count=1.0 / float(N * L),
            pad_count=float(N * (L_pad - L)),
            low_precision_apply=low_precision_apply,
        ),
        out_shape=(
            jax.ShapeDtypeStruct((N, C, L_pad), x.dtype),
            jax.ShapeDtypeStruct((num_tiles, 1, 1), jnp.int32),
        ),
        grid=(num_tiles,),
        in_specs=[
            pl.BlockSpec((N, tile_c, L_pad), lambda i: (0, i, 0)),
            pl.BlockSpec((1, tile_c, 1), lambda i: (0, i, 0)),
            pl.BlockSpec((1, tile_c, 1), lambda i: (0, i, 0)),
        ],
        out_specs=(
            pl.BlockSpec((N, tile_c, L_pad), lambda i: (0, i, 0)),
            pl.BlockSpec((1, 1, 1), lambda i: (i, 0, 0)),
        ),
        compiler_params=pltpu.CompilerParams(
            dimension_semantics=("parallel",),
            vmem_limit_bytes=vmem_limit,
        ),
    )(x_in, g3, b3)

    y = y_pad if L_pad == L else y_pad[:, :, :L]

    # NaN pass-through: return the input unchanged iff any NaN anywhere.
    # Per-tile flags are a handful of ints; lax.cond avoids the full-tensor
    # re-read/re-write that a jnp.where select would cost.
    has_nan = jnp.any(flags != 0)
    return jax.lax.cond(has_nan, lambda: x, lambda: y)


def _reference_bn1d(x, gamma, beta, eps=1e-5):
    xf = x.astype(jnp.float32)
    mean = jnp.mean(xf, axis=(0, 2), keepdims=True)
    var = jnp.mean((xf - mean) ** 2, axis=(0, 2), keepdims=True)
    y = (xf - mean) * jax.lax.rsqrt(var + eps)
    y = y * gamma.reshape(1, -1, 1) + beta.reshape(1, -1, 1)
    return jnp.where(jnp.any(jnp.isnan(x)), x, y.astype(x.dtype))


if __name__ == "__main__":
    key = jax.random.PRNGKey(0)

    # Case 1: small shape matching the module's (N, C, L) convention.
    N, C, L = 2, 4, 16
    x = jax.random.normal(key, (N, C, L), dtype=jnp.float32)
    # nn.BatchNorm1d(C) default parameter init: weight = ones, bias = zeros.
    gamma = jnp.ones((C,), dtype=jnp.float32)
    beta = jnp.zeros((C,), dtype=jnp.float32)

    out = batch_norm_1d(x, gamma, beta)
    jax.block_until_ready(out)
    ref = _reference_bn1d(x, gamma, beta)
    assert jnp.allclose(out, ref, atol=2e-3, rtol=2e-3), "mismatch vs reference (case 1)"

    # Case 2: multi-tile, lane-dense path (C tiled into >=2 blocks, L % 128 == 0),
    # with an offset mean and non-trivial affine parameters.
    N2, C2, L2 = 2, 16, 128
    k2, k3 = jax.random.split(key)
    x2 = 3.0 + 0.5 * jax.random.normal(k2, (N2, C2, L2), dtype=jnp.float32)
    g2 = jax.random.normal(k3, (C2,), dtype=jnp.float32)
    b2 = jnp.linspace(-1.0, 1.0, C2, dtype=jnp.float32)
    out2 = batch_norm_1d(x2, g2, b2)
    jax.block_until_ready(out2)
    ref2 = _reference_bn1d(x2, g2, b2)
    assert jnp.allclose(out2, ref2, atol=2e-3, rtol=2e-3), "mismatch vs reference (case 2)"

    # NaN pass-through path: output must equal the (NaN-containing) input.
    x_nan = x.at[0, 1, 3].set(jnp.nan)
    out_nan = batch_norm_1d(x_nan, gamma, beta)
    jax.block_until_ready(out_nan)
    assert bool(jnp.all(jnp.isnan(out_nan) == jnp.isnan(x_nan)))
    finite = ~jnp.isnan(x_nan)
    assert bool(jnp.all(jnp.where(finite, out_nan == x_nan, True)))

    print("KERNEL_OK")
</pallas_src>

<mosaic_0001>
module attributes {stable_mosaic.version = 11 : i64} {
  func.func @_bn1d_kernel(%arg0: i32, %arg1: memref<2x4x128xf32, #tpu.memory_space<vmem>>, %arg2: memref<1x4x1xf32, #tpu.memory_space<vmem>>, %arg3: memref<1x4x1xf32, #tpu.memory_space<vmem>>, %arg4: memref<2x4x128xf32, #tpu.memory_space<vmem>>, %arg5: memref<1x1x1xi32, #tpu.memory_space<vmem>>) attributes {dimension_semantics = [#tpu.dimension_semantics<parallel>], iteration_bounds = array<i64: 1>, scalar_prefetch = 0 : i64, scratch_operands = 0 : i64, tpu.core_type = #tpu.core_type<tc>, window_params = [{transform_indices = @transform_0, window_bounds = array<i64: 2, 4, 128>}, {transform_indices = @transform_1, window_bounds = array<i64: 1, 4, 1>}, {transform_indices = @transform_2, window_bounds = array<i64: 1, 4, 1>}, {transform_indices = @transform_3, window_bounds = array<i64: 2, 4, 128>}, {transform_indices = @transform_4, window_bounds = array<i64: 1, 1, 1>}]} {
    %c0 = arith.constant 0 : index
    %c0_0 = arith.constant 0 : index
    %c0_1 = arith.constant 0 : index
    %0 = vector.load %arg1[%c0, %c0_0, %c0_1] : memref<2x4x128xf32, #tpu.memory_space<vmem>>, vector<2x4x128xf32>
    %1 = arith.cmpf one, %0, %0 : vector<2x4x128xf32>
    %2 = arith.extui %1 : vector<2x4x128xi1> to vector<2x4x128xi32>
    %3 = arith.sitofp %2 : vector<2x4x128xi32> to vector<2x4x128xf32>
    %cst = arith.constant dense<0xFF800000> : vector<4xf32>
    %4 = vector.multi_reduction <maximumf>, %3, %cst [0, 2] : vector<2x4x128xf32> to vector<4xf32>
    %5 = vector.shape_cast %4 : vector<4xf32> to vector<1x4x1xf32>
    %cst_2 = arith.constant dense<0xFF800000> : vector<1x1xf32>
    %6 = vector.multi_reduction <maximumf>, %5, %cst_2 [1] : vector<1x4x1xf32> to vector<1x1xf32>
    %7 = vector.shape_cast %6 : vector<1x1xf32> to vector<1x1x1xf32>
    %8 = arith.fptosi %7 : vector<1x1x1xf32> to vector<1x1x1xi32>
    %c0_3 = arith.constant 0 : index
    %c0_4 = arith.constant 0 : index
    %c0_5 = arith.constant 0 : index
    %9 = vector.load %arg5[%c0_3, %c0_4, %c0_5] : memref<1x1x1xi32, #tpu.memory_space<vmem>>, vector<1x1x1xi32>
    tpu.vector_store %arg5[%c0_3, %c0_4, %c0_5], %8 {strides = array<i32>} : memref<1x1x1xi32, #tpu.memory_space<vmem>>, vector<1x1x1xi32>,
    %cst_6 = arith.constant dense<0.000000e+00> : vector<4xf32>
    %10 = vector.multi_reduction <add>, %0, %cst_6 [0, 2] : vector<2x4x128xf32> to vector<4xf32>
    %11 = vector.shape_cast %10 : vector<4xf32> to vector<1x4x1xf32>
    %cst_7 = arith.constant 3.125000e-02 : f32
    %12 = vector.broadcast %cst_7 : f32 to vector<1x4x1xf32>
    %13 = arith.mulf %11, %12 : vector<1x4x1xf32>
    %14 = vector.broadcast %13 : vector<1x4x1xf32> to vector<2x4x128xf32>
    %15 = arith.subf %0, %14 : vector<2x4x128xf32>
    %16 = arith.mulf %15, %15 : vector<2x4x128xf32>
    %cst_8 = arith.constant dense<0.000000e+00> : vector<4xf32>
    %17 = vector.multi_reduction <add>, %16, %cst_8 [0, 2] : vector<2x4x128xf32> to vector<4xf32>
    %18 = vector.shape_cast %17 : vector<4xf32> to vector<1x4x1xf32>
    %19 = arith.mulf %13, %13 : vector<1x4x1xf32>
    %cst_9 = arith.constant 2.240000e+02 : f32
    %20 = vector.broadcast %cst_9 : f32 to vector<1x4x1xf32>
    %21 = arith.mulf %20, %19 : vector<1x4x1xf32>
    %22 = arith.subf %18, %21 : vector<1x4x1xf32>
    %cst_10 = arith.constant 3.125000e-02 : f32
    %23 = vector.broadcast %cst_10 : f32 to vector<1x4x1xf32>
    %24 = arith.mulf %22, %23 : vector<1x4x1xf32>
    %cst_11 = arith.constant 0.000000e+00 : f32
    %25 = vector.broadcast %cst_11 : f32 to vector<1x4x1xf32>
    %26 = arith.maximumf %24, %25 : vector<1x4x1xf32>
    %cst_12 = arith.constant 9.99999974E-6 : f32
    %27 = vector.broadcast %cst_12 : f32 to vector<1x4x1xf32>
    %28 = arith.addf %26, %27 : vector<1x4x1xf32>
    %29 = math.rsqrt %28 : vector<1x4x1xf32>
    %c0_13 = arith.constant 0 : index
    %c0_14 = arith.constant 0 : index
    %c0_15 = arith.constant 0 : index
    %30 = vector.load %arg2[%c0_13, %c0_14, %c0_15] : memref<1x4x1xf32, #tpu.memory_space<vmem>>, vector<1x4x1xf32>
    %c0_16 = arith.constant 0 : index
    %c0_17 = arith.constant 0 : index
    %c0_18 = arith.constant 0 : index
    %31 = vector.load %arg3[%c0_16, %c0_17, %c0_18] : memref<1x4x1xf32, #tpu.memory_space<vmem>>, vector<1x4x1xf32>
    %32 = arith.mulf %30, %29 : vector<1x4x1xf32>
    %33 = arith.mulf %13, %32 : vector<1x4x1xf32>
    %34 = arith.subf %31, %33 : vector<1x4x1xf32>
    %35 = vector.broadcast %32 : vector<1x4x1xf32> to vector<2x4x128xf32>
    %36 = arith.mulf %0, %35 : vector<2x4x128xf32>
    %37 = vector.broadcast %34 : vector<1x4x1xf32> to vector<2x4x128xf32>
    %38 = arith.addf %36, %37 : vector<2x4x128xf32>
    %c0_19 = arith.constant 0 : index
    %c0_20 = arith.constant 0 : index
    %c0_21 = arith.constant 0 : index
    %39 = vector.load %arg4[%c0_19, %c0_20, %c0_21] : memref<2x4x128xf32, #tpu.memory_space<vmem>>, vector<2x4x128xf32>
    tpu.vector_store %arg4[%c0_19, %c0_20, %c0_21], %38 {strides = array<i32>} : memref<2x4x128xf32, #tpu.memory_space<vmem>>, vector<2x4x128xf32>,
    return
  }
  func.func @transform_0(%arg0: i32) -> (i32, i32, i32) {
    %c0_i32 = arith.constant 0 : i32
    %c0_i32_0 = arith.constant 0 : i32
    %c0_i32_1 = arith.constant 0 : i32
    return %c0_i32, %arg0, %c0_i32_0 : i32, i32, i32
  }
  func.func @transform_1(%arg0: i32) -> (i32, i32, i32) {
    %c0_i32 = arith.constant 0 : i32
    %c0_i32_0 = arith.constant 0 : i32
    %c0_i32_1 = arith.constant 0 : i32
    return %c0_i32, %arg0, %c0_i32_0 : i32, i32, i32
  }
  func.func @transform_2(%arg0: i32) -> (i32, i32, i32) {
    %c0_i32 = arith.constant 0 : i32
    %c0_i32_0 = arith.constant 0 : i32
    %c0_i32_1 = arith.constant 0 : i32
    return %c0_i32, %arg0, %c0_i32_0 : i32, i32, i32
  }
  func.func @transform_3(%arg0: i32) -> (i32, i32, i32) {
    %c0_i32 = arith.constant 0 : i32
    %c0_i32_0 = arith.constant 0 : i32
    %c0_i32_1 = arith.constant 0 : i32
    return %c0_i32, %arg0, %c0_i32_0 : i32, i32, i32
  }
  func.func @transform_4(%arg0: i32) -> (i32, i32, i32) {
    %c0_i32 = arith.constant 0 : i32
    %c0_i32_0 = arith.constant 0 : i32
    %c0_i32_1 = arith.constant 0 : i32
    return %arg0, %c0_i32, %c0_i32_0 : i32, i32, i32
  }
}

</mosaic_0001>

<bundles_post_ra>
// kernel: tpu_custom_call.1
= control target key start
LH: loop header
LB: loop body
LE: loop exit
PB: predicated region body
PF: predicated region fallthrough
CT: control target
= control target key end

     0   :  { %10 = vsyncpa [#allocation3], 0  ;;  %vm26_vm0 = vcmask 1043456   ;;  %s243_s0 = inlined_call_operand.vmem [shape: f32[2,4,128], index: 0, kind: input, shape index: {}]   ;;  %s244_s1 = inlined_call_operand.vmem [shape: f32[1,4,1], index: 1, kind: input, shape index: {}]   ;;  %s245_s2 = inlined_call_operand.vmem [shape: f32[1,4,1], index: 2, kind: input, shape index: {}]   ;;  %s246_s3 = inlined_call_operand.hbm [shape: f32[2,4,128], index: 3, kind: output, shape index: {0}]   ;;  %s247_s4 = inlined_call_operand.hbm [shape: s32[1,1,1], index: 4, kind: output, shape index: {1}]  }
   0x1   :  { %v207_v0 = vld [vmem:[%s243_s0] sm:$0xf]  ;;  %v212_v1 = vld [vmem:[%s243_s0 + $0x4] sm:$0xf] }
   0x2   :  { %v42_v2 = vsel %vm26_vm0, %v207_v0, 0.0  ;;  %v43_v3 = vsel %vm26_vm0, %v212_v1, 0.0 }
   0x3   :  { %11 = vsyncpa [#allocation5], 0  ;;  %v44_v4 = vadd.f32 %v43_v3, %v42_v2  ;;  %vm20_vm1 = vcmp.ne.f32.partialorder %v207_v0, %v207_v0  ;;  %vm21_vm2 = vcmp.ne.f32.partialorder %v212_v1, %v212_v1  ;;  %v173_v5 = vmov 0.0   ;;  %v64_v38 = vld [vmem:[%s244_s1] sm:$0xf]  ;;  %s175_s22 = smov [#allocation4]  }
   0x4   :  { %v115_v6 = vsel %vm20_vm1, 1.0, %v173_v5  ;;  %v116_v7 = vsel %vm21_vm2, 1.0, %v173_v5  ;;  %v174_v20 = vmov 0   ;;  %vm40_vm3 = vcmask 0   ;;  %v65_v41 = vld [vmem:[%s245_s2] sm:$0xf] }
   0x5   :  { %45 = vadd.xlane.f32.xlu0 %v44_v4  ;;  %v27_v8 = vsel %vm26_vm0, %v115_v6, -inf  ;;  %v28_v9 = vsel %vm26_vm0, %v116_v7, -inf  ;;  %125 = vset.pattern.permute.xlu1 %v174_v20  ;;  %s103_s23 = sshll.u32 %s175_s22, 4  ;;  %s104_s23 = int_to_ptr.vmem [resolvable:$true] %s103_s23 }
   0x6   :  { %v29_v10 = vmax.f32 %v27_v8, %v28_v9  ;;  %126 = vset.pattern.permute.xlu0 %v174_v20  ;;  %s129_s24 = scalar_lea.vmem %s104_s23, 16  ;;  %s133_s25 = scalar_lea.vmem %s104_s23, 32 }
   0x7   :  { %p130_p0 = scmp.ne.s32.totalorder %s104_s23, %s129_s24  ;;  %p134_p1 = scmp.lt.s32.totalorder %s104_s23, %s104_s23 }
   0x8   :  { %30 = vmax.xlane.f32.xlu1 %v29_v10  ;;  %p135_p2 = scmp.lt.s32.totalorder %s133_s25, %s129_s24 }
   0xa   :  { %p136_p3 = por %p135_p2, %p134_p1 }
   0xc   :  { %p137_p4 = pnand %p136_p3, %p130_p0 }
  0x8e   :  { %v46_v11 = vpop.xlane.xlu0 %45 }
  0x8f   :  { %v47_v12 = vmul.f32 0.03125, %v46_v11 }
  0x91   :  { %v48_v13 = vsub.f32 %v207_v0, %v47_v12  ;;  %v49_v14 = vsub.f32 %v212_v1, %v47_v12  ;;  %v31_v21 = vpop.xlane.xlu1 %30  ;;  %v57_v23 = vmul.f32 %v47_v12, %v47_v12 }
  0x92   :  { %v32_v22 = vsel %vm26_vm0, %v31_v21, -inf }
  0x93   :  { %v50_v15 = vmul.f32 %v48_v13, %v48_v13  ;;  %v51_v16 = vmul.f32 %v49_v14, %v49_v14  ;;  %v33_v24 = vrot.slane %v32_v22, 4  ;;  %v58_v25 = vmul.f32 224.0, %v57_v23 }
  0x95   :  { %v52_v17 = vsel %vm26_vm0, %v50_v15, 0.0  ;;  %v53_v18 = vsel %vm26_vm0, %v51_v16, 0.0  ;;  %v34_v26 = vmax.f32 %v32_v22, %v33_v24 }
  0x96   :  { %v54_v19 = vadd.f32 %v53_v18, %v52_v17 }
  0x97   :  { %v35_v30 = vrot.slane %v34_v26, 2 }
  0x98   :  { %55 = vadd.xlane.f32.xlu0 %v54_v19 }
  0x99   :  { %v36_v33 = vmax.f32 %v34_v26, %v35_v30 }
  0x9b   :  { %v37_v34 = vrot.slane %v36_v33, 1 }
  0x9d   :  { %v38_v35 = vmax.f32 %v36_v33, %v37_v34 }
  0x9f   :  { %v117_v36 = vtrunc.f32 %v38_v35 }
  0xa1   :  { %v118_v37 = vcvt.f32.s32 %v117_v36 }
  0xa3   :  { %41 = vst.msk [vmem:[#allocation4] sm:$0x1] %vm40_vm3, %v118_v37 }
 0x121   :  { %v56_v27 = vpop.xlane.xlu0 %55 }
 0x122   :  { %v59_v28 = vsub.f32 %v56_v27, %v58_v25 }
 0x124   :  { %v60_v29 = vmul.f32 0.03125, %v59_v28 }
 0x126   :  { %v61_v31 = vmax.f32 %v60_v29, 0.0 }
 0x128   :  { %v62_v32 = vadd.f32 1e-05, %v61_v31 }
 0x12a   :  { %127 = vrsqrt.f32 %v62_v32 }
 0x137   :  { %v128_v39 = vpop.eup %127 }
 0x138   :  { %v66_v40 = vmul.f32 %v128_v39, %v64_v38 }
 0x13a   :  { %71 = vperm.xlu1 %125, %v66_v40   ;;  %v67_v42 = vmul.f32 %v66_v40, %v47_v12 }
 0x13c   :  { %v68_v43 = vsub.f32 %v65_v41, %v67_v42 }
 0x13e   :  { %78 = vperm.xlu0 %126, %v68_v43  }
 0x13f   :  { %140 = shalt.err (!%p137_p4)
}
 0x140   :  { %106 = dma.vmem_to_hbm [thread:$0]  %s104_s23, 16, %s247_s4, [#allocation5]  }
 0x141   :  { %s176_s2 = smov [#allocation2]  }
 0x142   :  { %s90_s27 = sshll.u32 %s176_s2, 4  ;;  %s91_s27 = int_to_ptr.vmem [resolvable:$true] %s90_s27 }
 0x143   :  { %s149_s28 = scalar_lea.vmem %s91_s27, 128  ;;  %p154_p6 = scmp.lt.s32.totalorder %s91_s27, %s91_s27 }
 0x144   :  { %p150_p5 = scmp.ne.s32.totalorder %s91_s27, %s149_s28  ;;  %p155_p7 = scmp.lt.s32.totalorder %s149_s28, %s149_s28 }
 0x146   :  { %p156_p8 = por %p155_p7, %p154_p6 }
 0x148   :  { %p157_p9 = pnand %p156_p8, %p150_p5 }
 0x1b5   :  { %v72_v44 = vpop.permute.xlu1 %71 }
 0x1b6   :  { %v74_v45 = vmul.f32 %v72_v44, %v207_v0  ;;  %v75_v46 = vmul.f32 %v72_v44, %v212_v1 }
 0x1b9   :  { %v79_v47 = vpop.permute.xlu0 %78 }
 0x1ba   :  { %v81_v48 = vadd.f32 %v79_v47, %v74_v45  ;;  %v82_v49 = vadd.f32 %v79_v47, %v75_v46 }
 0x1bc   :  { %83 = vst [vmem:[#allocation2] sm:$0xf] %v81_v48  ;;  %84 = vst [vmem:[#allocation2 + $0x4] sm:$0xf] %v82_v49 }
 0x1bd   :  { %160 = shalt.err (!%p157_p9)
}
 0x1be   :  { %s177_s4 = smov 64   ;;  %s178_s29 = smov 4  }
 0x1bf   :  { %96 = dma.vmem_to_hbm [thread:$0]  %s91_s27, 128, %s246_s3, [#allocation3], %s177_s4, %s177_s4, %s178_s29  }
 0x1c0   :  { %169 = dma.done.wait [#allocation3], 128  }
 0x1c1   :  { %170 = vsyncadd [#allocation3], 4294967168 }
 0x1c2   :  { %171 = dma.done.wait [#allocation5], 16  }
 0x1c3   :  { %172 = vsyncadd [#allocation5], 4294967280 }
 0x1c4   :  { %113 = vsyncpa [#allocation3], 1 }
 0x1c5   :  { %114 = vsyncpa [#allocation5], 1 }

</bundles_post_ra>
